<compile_context>
chip_gen: v7x
topology: tpu7x:2x2x1
jax: 0.10.0
libtpu: 0.0.40
codegen_flags: <defaults>
</compile_context>

<pallas_src>
import functools

import jax
import jax.numpy as jnp
import numpy as np
from jax import lax
from jax.experimental import pallas as pl
from jax.experimental.pallas import tpu as pltpu

C_IN = 2
C_OUT = 32
K = 2            # conv kernel size
DIL = 2          # conv dilation
PAD = 1          # conv padding
POOL = 2         # maxpool kernel (stride 1)
B_BLK_MAX = 8    # max batch images per grid step


def _conv1_kernel(x_ref, w_ref, b_ref, o_ref):
    """Fused dilated-conv + maxpool for one batch block.

    x_ref : (B, H+2, (W+2)*C_IN)     zero-padded input, (W, C_IN) folded on lanes
    w_ref : (K*K, W*C_IN, W*C_OUT)   per-tap block-diagonal conv weights
    b_ref : (1, (W-1)*C_OUT)         bias tiled across pooled W positions
    o_ref : (B, H-1, (W-1)*C_OUT)    pooled output, (W, C_OUT) folded on lanes
    """
    bsz = x_ref.shape[0]
    hp = o_ref.shape[1]                       # pooled height  = H - 1
    wp_lanes = o_ref.shape[2]                 # (W - 1) * C_OUT
    hc = hp + (POOL - 1)                      # conv output height = H
    wc = wp_lanes // C_OUT + (POOL - 1)       # conv output width  = W

    x = x_ref[...]                            # (B, H+2, (W+2)*C_IN)

    # Dilated 2x2 conv as 4 per-tap MXU matmuls accumulated in f32.
    # Each tap keeps the fused (W*C_IN) lane layout and the block-diagonal
    # weight writes the result straight into the fused (W*C_OUT) layout.
    acc = None
    tap_idx = 0
    for kh in range(K):
        for kw in range(K):
            tap = x[:, DIL * kh:DIL * kh + hc,
                    C_IN * DIL * kw:C_IN * DIL * kw + C_IN * wc]
            contrib = jnp.dot(tap.reshape(bsz * hc, C_IN * wc),
                              w_ref[tap_idx],
                              preferred_element_type=jnp.float32)
            acc = contrib if acc is None else acc + contrib
            tap_idx += 1
    # acc: (B*Hc, Wc*C_OUT)

    # MaxPool2d(kernel=2, stride=1):
    #   W-neighbor lives +C_OUT lanes away on the fused axis,
    #   H-neighbor lives +1 row away (rows that straddle two images are
    #   discarded by the per-image store slices below).
    colmax = jnp.maximum(acc[:, :wp_lanes], acc[:, C_OUT:])      # (B*Hc, Wp*C_OUT)
    rowmax = jnp.maximum(colmax[:-1, :], colmax[1:, :])          # (B*Hc-1, Wp*C_OUT)

    # Per-channel bias commutes with max -> add it post-pool (fewer rows).
    pooled = rowmax + b_ref[...]

    # Static unroll over the batch block; row offsets b*Hc are 8-aligned
    # whenever H % 8 == 0, so these are plain dense slab stores.
    for b in range(bsz):
        o_ref[b] = pooled[b * hc:b * hc + hp, :].astype(o_ref.dtype)


@jax.jit
def conv1_forward(x_nchw, weight, bias):
    """x_nchw: (N, 2, H, W) f32.  weight: (32, 2, 2, 2).  bias: (32,)."""
    n, c, h, w = x_nchw.shape
    assert c == C_IN

    # Conv output spatial size (stride 1): H + 2*PAD - DIL*(K-1) - 1 + 1 = H
    hc = h + 2 * PAD - DIL * (K - 1)
    wc = w + 2 * PAD - DIL * (K - 1)
    hp = hc - (POOL - 1)
    wp = wc - (POOL - 1)
    h_pad, w_pad = h + 2 * PAD, w + 2 * PAD

    # Batch blocking: B images per grid step (pad N up to a multiple of B).
    b_blk = min(B_BLK_MAX, n)
    n_pad = pl.cdiv(n, b_blk) * b_blk

    # Single fused pass: NCHW -> NHWC, zero-pad spatial (padding=1) and batch.
    # The (W_pad, C_IN) -> W_pad*C_IN fold is a free (layout-preserving) reshape.
    x_nhwc = jnp.transpose(x_nchw, (0, 2, 3, 1))
    x_padded = jnp.pad(x_nhwc, ((0, n_pad - n), (PAD, PAD), (PAD, PAD), (0, 0)))
    x_fold = x_padded.reshape(n_pad, h_pad, w_pad * C_IN)

    # Per-tap block-diagonal weights: tap (kh,kw) maps the fused (Wc*C_IN)
    # lanes onto the fused (Wc*C_OUT) lanes with the (C_IN, C_OUT) weight on
    # the diagonal.  Tiny (K*K * Wc*C_IN * Wc*C_OUT floats), built once.
    eye_w = jnp.eye(wc, dtype=weight.dtype)
    w_taps = []
    for kh in range(K):
        for kw in range(K):
            w_taps.append(jnp.kron(eye_w, weight[:, :, kh, kw].T))
    w_block = jnp.stack(w_taps)                       # (K*K, Wc*C_IN, Wc*C_OUT)

    bias_fold = jnp.tile(bias, wp).reshape(1, wp * C_OUT)

    grid = (n_pad // b_blk,)
    out_fold = pl.pallas_call(
        _conv1_kernel,
        out_shape=jax.ShapeDtypeStruct((n_pad, hp, wp * C_OUT), jnp.float32),
        grid=grid,
        in_specs=[
            pl.BlockSpec((b_blk, h_pad, w_pad * C_IN), lambda g: (g, 0, 0)),
            pl.BlockSpec((K * K, wc * C_IN, wc * C_OUT), lambda g: (0, 0, 0)),
            pl.BlockSpec((1, wp * C_OUT), lambda g: (0, 0)),
        ],
        out_specs=pl.BlockSpec((b_blk, hp, wp * C_OUT), lambda g: (g, 0, 0)),
        compiler_params=pltpu.CompilerParams(
            dimension_semantics=("parallel",)),   # shards batch blocks on v7x 2-TC
    )(x_fold, w_block, bias_fold)

    # Un-fold lanes and return NCHW to match the PyTorch module's convention.
    out_nhwc = out_fold[:n].reshape(n, hp, wp, C_OUT)
    return jnp.transpose(out_nhwc, (0, 3, 1, 2))


def _reference(x_nchw, weight, bias):
    """Pure-JAX reference matching nn.Conv2d + nn.MaxPool2d semantics."""
    conv = lax.conv_general_dilated(
        x_nchw, weight,
        window_strides=(1, 1),
        padding=((PAD, PAD), (PAD, PAD)),
        rhs_dilation=(DIL, DIL),
        dimension_numbers=("NCHW", "OIHW", "NCHW"),
    ) + bias.reshape(1, C_OUT, 1, 1)
    pooled = lax.reduce_window(
        conv, -jnp.inf, lax.max,
        window_dimensions=(1, 1, POOL, POOL),
        window_strides=(1, 1, 1, 1),
        padding="VALID",
    )
    return pooled


if __name__ == "__main__":
    key = jax.random.PRNGKey(0)
    kx, kw, kb = jax.random.split(key, 3)

    # Small deterministic example: batch=4, in_channels=2 (fixed by the
    # module), spatial 16x16.
    N, H, W = 4, 16, 16
    x = jax.random.normal(kx, (N, C_IN, H, W), dtype=jnp.float32)

    # Deterministic parameter init (shapes from nn.Conv2d(2, 32, 2)).
    fan_in = C_IN * K * K
    bound = 1.0 / np.sqrt(fan_in)
    weight = jax.random.uniform(kw, (C_OUT, C_IN, K, K), jnp.float32, -bound, bound)
    bias = jax.random.uniform(kb, (C_OUT,), jnp.float32, -bound, bound)

    out = conv1_forward(x, weight, bias)
    out = jax.block_until_ready(out)

    ref = _reference(x, weight, bias)
    np.testing.assert_allclose(np.asarray(out), np.asarray(ref), rtol=1e-5, atol=1e-5)
    assert out.shape == (N, C_OUT, H - 1, W - 1)

    print("KERNEL_OK")
</pallas_src>

<mosaic_0001>
module attributes {stable_mosaic.version = 11 : i64} {
  func.func @_conv1_kernel(%arg0: i32, %arg1: memref<4x18x36xf32, #tpu.memory_space<vmem>>, %arg2: memref<4x32x512xf32, #tpu.memory_space<vmem>>, %arg3: memref<1x480xf32, #tpu.memory_space<vmem>>, %arg4: memref<4x15x480xf32, #tpu.memory_space<vmem>>) attributes {dimension_semantics = [#tpu.dimension_semantics<parallel>], iteration_bounds = array<i64: 1>, scalar_prefetch = 0 : i64, scratch_operands = 0 : i64, tpu.core_type = #tpu.core_type<tc>, window_params = [{transform_indices = @transform_0, window_bounds = array<i64: 4, 18, 36>}, {pipeline_mode = #tpu.pipeline_mode<synchronous>, transform_indices = @transform_1, window_bounds = array<i64: 4, 32, 512>}, {pipeline_mode = #tpu.pipeline_mode<synchronous>, transform_indices = @transform_2, window_bounds = array<i64: 1, 480>}, {transform_indices = @transform_3, window_bounds = array<i64: 4, 15, 480>}]} {
    %c0 = arith.constant 0 : index
    %c0_0 = arith.constant 0 : index
    %c0_1 = arith.constant 0 : index
    %0 = vector.load %arg1[%c0, %c0_0, %c0_1] : memref<4x18x36xf32, #tpu.memory_space<vmem>>, vector<4x18x36xf32>
    %1 = vector.extract_strided_slice %0 {offsets = [0, 0, 0], sizes = [4, 16, 32], strides = [1, 1, 1]} : vector<4x18x36xf32> to vector<4x16x32xf32>
    %2 = vector.shape_cast %1 : vector<4x16x32xf32> to vector<64x32xf32>
    %c0_2 = arith.constant 0 : index
    %c0_3 = arith.constant 0 : index
    %c0_4 = arith.constant 0 : index
    %3 = vector.load %arg2[%c0_2, %c0_3, %c0_4] : memref<4x32x512xf32, #tpu.memory_space<vmem>>, vector<1x32x512xf32>
    %4 = vector.shape_cast %3 : vector<1x32x512xf32> to vector<32x512xf32>
    %cst = arith.constant dense<0.000000e+00> : vector<64x512xf32>
    %5 = tpu.matmul %2, %4, %cst {dimension_numbers = #tpu.dot_dimension_numbers<[1], [0], [0], [1], [0, 0, 1, 1], [], []>} : vector<64x32xf32>, vector<32x512xf32>, vector<64x512xf32> -> vector<64x512xf32>
    %6 = vector.extract_strided_slice %0 {offsets = [0, 0, 4], sizes = [4, 16, 32], strides = [1, 1, 1]} : vector<4x18x36xf32> to vector<4x16x32xf32>
    %7 = vector.shape_cast %6 : vector<4x16x32xf32> to vector<64x32xf32>
    %c1 = arith.constant 1 : index
    %c0_5 = arith.constant 0 : index
    %c0_6 = arith.constant 0 : index
    %8 = vector.load %arg2[%c1, %c0_5, %c0_6] : memref<4x32x512xf32, #tpu.memory_space<vmem>>, vector<1x32x512xf32>
    %9 = vector.shape_cast %8 : vector<1x32x512xf32> to vector<32x512xf32>
    %cst_7 = arith.constant dense<0.000000e+00> : vector<64x512xf32>
    %10 = tpu.matmul %7, %9, %cst_7 {dimension_numbers = #tpu.dot_dimension_numbers<[1], [0], [0], [1], [0, 0, 1, 1], [], []>} : vector<64x32xf32>, vector<32x512xf32>, vector<64x512xf32> -> vector<64x512xf32>
    %11 = arith.addf %5, %10 : vector<64x512xf32>
    %12 = vector.extract_strided_slice %0 {offsets = [0, 2, 0], sizes = [4, 16, 32], strides = [1, 1, 1]} : vector<4x18x36xf32> to vector<4x16x32xf32>
    %13 = vector.shape_cast %12 : vector<4x16x32xf32> to vector<64x32xf32>
    %c2 = arith.constant 2 : index
    %c0_8 = arith.constant 0 : index
    %c0_9 = arith.constant 0 : index
    %14 = vector.load %arg2[%c2, %c0_8, %c0_9] : memref<4x32x512xf32, #tpu.memory_space<vmem>>, vector<1x32x512xf32>
    %15 = vector.shape_cast %14 : vector<1x32x512xf32> to vector<32x512xf32>
    %cst_10 = arith.constant dense<0.000000e+00> : vector<64x512xf32>
    %16 = tpu.matmul %13, %15, %cst_10 {dimension_numbers = #tpu.dot_dimension_numbers<[1], [0], [0], [1], [0, 0, 1, 1], [], []>} : vector<64x32xf32>, vector<32x512xf32>, vector<64x512xf32> -> vector<64x512xf32>
    %17 = arith.addf %11, %16 : vector<64x512xf32>
    %18 = vector.extract_strided_slice %0 {offsets = [0, 2, 4], sizes = [4, 16, 32], strides = [1, 1, 1]} : vector<4x18x36xf32> to vector<4x16x32xf32>
    %19 = vector.shape_cast %18 : vector<4x16x32xf32> to vector<64x32xf32>
    %c3 = arith.constant 3 : index
    %c0_11 = arith.constant 0 : index
    %c0_12 = arith.constant 0 : index
    %20 = vector.load %arg2[%c3, %c0_11, %c0_12] : memref<4x32x512xf32, #tpu.memory_space<vmem>>, vector<1x32x512xf32>
    %21 = vector.shape_cast %20 : vector<1x32x512xf32> to vector<32x512xf32>
    %cst_13 = arith.constant dense<0.000000e+00> : vector<64x512xf32>
    %22 = tpu.matmul %19, %21, %cst_13 {dimension_numbers = #tpu.dot_dimension_numbers<[1], [0], [0], [1], [0, 0, 1, 1], [], []>} : vector<64x32xf32>, vector<32x512xf32>, vector<64x512xf32> -> vector<64x512xf32>
    %23 = arith.addf %17, %22 : vector<64x512xf32>
    %24 = vector.extract_strided_slice %23 {offsets = [0, 0], sizes = [64, 480], strides = [1, 1]} : vector<64x512xf32> to vector<64x480xf32>
    %25 = vector.extract_strided_slice %23 {offsets = [0, 32], sizes = [64, 480], strides = [1, 1]} : vector<64x512xf32> to vector<64x480xf32>
    %26 = arith.maximumf %24, %25 : vector<64x480xf32>
    %27 = vector.extract_strided_slice %26 {offsets = [0, 0], sizes = [63, 480], strides = [1, 1]} : vector<64x480xf32> to vector<63x480xf32>
    %28 = vector.extract_strided_slice %26 {offsets = [1, 0], sizes = [63, 480], strides = [1, 1]} : vector<64x480xf32> to vector<63x480xf32>
    %29 = arith.maximumf %27, %28 : vector<63x480xf32>
    %c0_14 = arith.constant 0 : index
    %c0_15 = arith.constant 0 : index
    %30 = vector.load %arg3[%c0_14, %c0_15] : memref<1x480xf32, #tpu.memory_space<vmem>>, vector<1x480xf32>
    %31 = vector.broadcast %30 : vector<1x480xf32> to vector<63x480xf32>
    %32 = arith.addf %29, %31 : vector<63x480xf32>
    %33 = vector.extract_strided_slice %32 {offsets = [0, 0], sizes = [15, 480], strides = [1, 1]} : vector<63x480xf32> to vector<15x480xf32>
    %c0_16 = arith.constant 0 : index
    %c0_17 = arith.constant 0 : index
    %c0_18 = arith.constant 0 : index
    %34 = vector.load %arg4[%c0_16, %c0_17, %c0_18] : memref<4x15x480xf32, #tpu.memory_space<vmem>>, vector<1x15x480xf32>
    %35 = vector.shape_cast %34 : vector<1x15x480xf32> to vector<15x480xf32>
    %36 = vector.shape_cast %33 : vector<15x480xf32> to vector<1x15x480xf32>
    tpu.vector_store %arg4[%c0_16, %c0_17, %c0_18], %36 {strides = array<i32>} : memref<4x15x480xf32, #tpu.memory_space<vmem>>, vector<1x15x480xf32>,
    %37 = vector.extract_strided_slice %32 {offsets = [16, 0], sizes = [15, 480], strides = [1, 1]} : vector<63x480xf32> to vector<15x480xf32>
    %c1_19 = arith.constant 1 : index
    %c0_20 = arith.constant 0 : index
    %c0_21 = arith.constant 0 : index
    %38 = vector.load %arg4[%c1_19, %c0_20, %c0_21] : memref<4x15x480xf32, #tpu.memory_space<vmem>>, vector<1x15x480xf32>
    %39 = vector.shape_cast %38 : vector<1x15x480xf32> to vector<15x480xf32>
    %40 = vector.shape_cast %37 : vector<15x480xf32> to vector<1x15x480xf32>
    tpu.vector_store %arg4[%c1_19, %c0_20, %c0_21], %40 {strides = array<i32>} : memref<4x15x480xf32, #tpu.memory_space<vmem>>, vector<1x15x480xf32>,
    %41 = vector.extract_strided_slice %32 {offsets = [32, 0], sizes = [15, 480], strides = [1, 1]} : vector<63x480xf32> to vector<15x480xf32>
    %c2_22 = arith.constant 2 : index
    %c0_23 = arith.constant 0 : index
    %c0_24 = arith.constant 0 : index
    %42 = vector.load %arg4[%c2_22, %c0_23, %c0_24] : memref<4x15x480xf32, #tpu.memory_space<vmem>>, vector<1x15x480xf32>
    %43 = vector.shape_cast %42 : vector<1x15x480xf32> to vector<15x480xf32>
    %44 = vector.shape_cast %41 : vector<15x480xf32> to vector<1x15x480xf32>
    tpu.vector_store %arg4[%c2_22, %c0_23, %c0_24], %44 {strides = array<i32>} : memref<4x15x480xf32, #tpu.memory_space<vmem>>, vector<1x15x480xf32>,
    %45 = vector.extract_strided_slice %32 {offsets = [48, 0], sizes = [15, 480], strides = [1, 1]} : vector<63x480xf32> to vector<15x480xf32>
    %c3_25 = arith.constant 3 : index
    %c0_26 = arith.constant 0 : index
    %c0_27 = arith.constant 0 : index
    %46 = vector.load %arg4[%c3_25, %c0_26, %c0_27] : memref<4x15x480xf32, #tpu.memory_space<vmem>>, vector<1x15x480xf32>
    %47 = vector.shape_cast %46 : vector<1x15x480xf32> to vector<15x480xf32>
    %48 = vector.shape_cast %45 : vector<15x480xf32> to vector<1x15x480xf32>
    tpu.vector_store %arg4[%c3_25, %c0_26, %c0_27], %48 {strides = array<i32>} : memref<4x15x480xf32, #tpu.memory_space<vmem>>, vector<1x15x480xf32>,
    return
  }
  func.func @transform_0(%arg0: i32) -> (i32, i32, i32) {
    %c0_i32 = arith.constant 0 : i32
    %c0_i32_0 = arith.constant 0 : i32
    %c0_i32_1 = arith.constant 0 : i32
    return %arg0, %c0_i32, %c0_i32_0 : i32, i32, i32
  }
  func.func @transform_1(%arg0: i32) -> (i32, i32, i32) {
    %c0_i32 = arith.constant 0 : i32
    %c0_i32_0 = arith.constant 0 : i32
    %c0_i32_1 = arith.constant 0 : i32
    %c0_i32_2 = arith.constant 0 : i32
    return %c0_i32, %c0_i32_0, %c0_i32_1 : i32, i32, i32
  }
  func.func @transform_2(%arg0: i32) -> (i32, i32) {
    %c0_i32 = arith.constant 0 : i32
    %c0_i32_0 = arith.constant 0 : i32
    %c0_i32_1 = arith.constant 0 : i32
    return %c0_i32, %c0_i32_0 : i32, i32
  }
  func.func @transform_3(%arg0: i32) -> (i32, i32, i32) {
    %c0_i32 = arith.constant 0 : i32
    %c0_i32_0 = arith.constant 0 : i32
    %c0_i32_1 = arith.constant 0 : i32
    return %arg0, %c0_i32, %c0_i32_0 : i32, i32, i32
  }
}

</mosaic_0001>

<bundles_post_ra>
// kernel: tile.8
= control target key start
LH: loop header
LB: loop body
LE: loop exit
PB: predicated region body
PF: predicated region fallthrough
CT: control target
= control target key end

     0   :  { %s28_s0 = inlined_call_operand.vmem [shape: f32[32], index: 0, kind: input, shape index: {}]   ;;  %s29_s1 = inlined_call_operand.vmem [shape: f32[15,32], index: 1, kind: output, shape index: {}]  }
   0x1   :  { %v4_v0 = vld [vmem:[%s28_s0] ss:$0 sm:$0xff] }
   0x2   :  { %5 = vst [vmem:[%s29_s1] sm:$0xff] %v4_v0  ;;  %8 = vst [vmem:[%s29_s1 + $0x8] sm:$0xff] %v4_v0 }

// kernel: tile.9
= control target key start
LH: loop header
LB: loop body
LE: loop exit
PB: predicated region body
PF: predicated region fallthrough
CT: control target
= control target key end

     0   :  { %s57_s8 = smov 96   ;;  %vm3_vm0 = vcmask 261120   ;;  %s59_s15 = smov 64   ;;  %vm9_vm1 = vcmask 1048320   ;;  %vm15_vm2 = vcmask 785920   ;;  %vm21_vm3 = vcmask 523520   ;;  %s94_s0 = inlined_call_operand.vmem [shape: f32[15,32], index: 0, kind: input, shape index: {}]   ;;  %s95_s1 = inlined_call_operand.vmem [shape: f32[1,480], index: 1, kind: output, shape index: {}]  }
   0x1   :  { %v48_v0 = vld [vmem:[%s94_s0 + $0x3] ss:$4 sm:$0x7]   ;;  %v49_v1 = vld [vmem:[%s94_s0 + $0x2] ss:$4 sm:$0xf]  }
   0x2   :  { %7 = vrot.lane.b32.xlu0 %v48_v0, %s57_s8  ;;  %v50_v2 = vld [vmem:[%s94_s0 + $0x1] ss:$4 sm:$0xf]   ;;  %v2_v3 = vld [vmem:[%s94_s0] ss:$4 sm:$0xf]  }
   0x3   :  { %s58_s0 = smov 32   ;;  %4 = vst.msk [vmem:[#allocation0] ss:$8 sm:$0xf] %vm3_vm0, %v2_v3  }
   0x4   :  { %19 = vrot.lane.b32.xlu1 %v50_v2, %s58_s0 }
   0x6   :  { %13 = vrot.lane.b32.xlu0 %v49_v1, %s59_s15 }
  0x74   :  { %v8_v4 = vpop.permute.xlu0 %7  }
  0x75   :  { %10 = vst.msk [vmem:[#allocation0] ss:$8 sm:$0x7] %vm9_vm1, %v8_v4  }
  0x76   :  { %v20_v5 = vpop.permute.xlu1 %19  }
  0x78   :  { %v14_v6 = vpop.permute.xlu0 %13  }
  0x79   :  { %16 = vst.msk [vmem:[#allocation0] ss:$8 sm:$0xf] %vm15_vm2, %v14_v6  }
  0x7a   :  { %22 = vst.msk [vmem:[#allocation0] ss:$8 sm:$0xf] %vm21_vm3, %v20_v5  }
  0x81   :  { %v26_v7 = vld [vmem:[#allocation0] sm:$0x1]  ;;  %v30_v8 = vld [vmem:[#allocation0 + $0x8] sm:$0x1]  ;;  %v35_v9 = vld [vmem:[#allocation0 + $0x10] sm:$0x1] }
  0x82   :  { %28 = vst [vmem:[%s95_s1] sm:$0x1] %v26_v7  ;;  %51 = vst [vmem:[%s95_s1 + $0x1] sm:$0x1] %v30_v8  ;;  %v41_v10 = vld [vmem:[#allocation0 + $0x18] sm:$0x1] }
  0x83   :  { %52 = vst [vmem:[%s95_s1 + $0x2] sm:$0x1] %v35_v9  ;;  %53 = vst [vmem:[%s95_s1 + $0x3] sm:$0x1] %v41_v10 }

// kernel: conv1_forward.1
= control target key start
LH: loop header
LB: loop body
LE: loop exit
PB: predicated region body
PF: predicated region fallthrough
CT: control target
= control target key end

     0   :  { %v1926_v2 = vmov 0.0   ;;  %s1927_s16 = smov 124   ;;  %vm572_vm0 = vcmask 1045504   ;;  %vm83_vm1 = vcmask 261120   ;;  %vm1287_vm2 = vcmask 785408   ;;  %s2780_s0 = inlined_call_operand.vmem [shape: f32[4,18,36], index: 0, kind: input, shape index: {}]   ;;  %s2781_s1 = inlined_call_operand.vmem [shape: f32[4,32,512], index: 1, kind: input, shape index: {}]   ;;  %s2782_s2 = inlined_call_operand.vmem [shape: f32[1,480], index: 2, kind: input, shape index: {}]   ;;  %s2783_s3 = inlined_call_operand.vmem [shape: f32[4,15,480], index: 3, kind: output, shape index: {}]  }
   0x1   :  { %v1952_v0 = vld [vmem:[%s2780_s0] sm:$0xff]  ;;  %v1957_v1 = vld [vmem:[%s2780_s0 + $0x18] sm:$0xff]  ;;  %164 = vmatprep.mubr.f32.mxu0 %v1926_v2  ;;  %277 = vmatprep.mubr.f32.mxu1 %v1926_v2  ;;  %v1968_v3 = vld [vmem:[%s2780_s0 + $0x8] sm:$0xff]  ;;  %vm1408_vm3 = vcmask 1046528   ;;  %vm1594_vm4 = vcmask 784384  }
   0x2   :  { %67 = vrot.lane.b32.xlu0 %v1952_v0, %s1927_s16  ;;  %71 = vrot.lane.b32.xlu1 %v1957_v1, %s1927_s16  ;;  %v1973_v4 = vld [vmem:[%s2780_s0 + $0x20] sm:$0xff]  ;;  %v1628_v5 = vld [vmem:[%s2781_s1 + $0x88] sm:$0xff]  ;;  %v573_v34 = vrot.slane %v1952_v0, 2  ;;  %v574_v35 = vrot.slane %v1968_v3, 2  ;;  %v578_v44 = vrot.slane %v1957_v1, 2 }
   0x3   :  { %v1632_v6 = vld [vmem:[%s2781_s1 + $0xa8] sm:$0xff]  ;;  %v1984_v7 = vld [vmem:[%s2780_s0 + $0x30] sm:$0xff]  ;;  %v1989_v8 = vld [vmem:[%s2780_s0 + $0x38] sm:$0xff]  ;;  %v579_v47 = vrot.slane %v1973_v4, 2 }
   0x4   :  { %v1763_v9 = vpack.c.bf16 %v1632_v6, %v1628_v5  ;;  %v1627_v10 = vld [vmem:[%s2781_s1 + $0x80] sm:$0xff]  ;;  %v1630_v12 = vld [vmem:[%s2781_s1 + $0x98] sm:$0xff]  ;;  %v1629_v15 = vld [vmem:[%s2781_s1 + $0x90] sm:$0xff]  ;;  %v2077_v45 = vsel %vm572_vm0, %v573_v34, %v574_v35  ;;  %v583_v50 = vrot.slane %v1984_v7, 2  ;;  %v584_v53 = vrot.slane %v1989_v8, 2 }
   0x5   :  { %v1631_v11 = vld [vmem:[%s2781_s1 + $0xa0] sm:$0xff]  ;;  %v1634_v14 = vld [vmem:[%s2781_s1 + $0xb8] sm:$0xff]  ;;  %v16_v16 = vld [vmem:[%s2780_s0 + $0x10] sm:$0x3]  ;;  %v2092_v51 = vsel %vm572_vm0, %v578_v44, %v579_v47 }
   0x6   :  { %69 = vrot.lane.b32.xlu0 %v1968_v3, %s1927_s16  ;;  %73 = vrot.lane.b32.xlu1 %v1973_v4, %s1927_s16  ;;  %v1765_v13 = vpack.c.bf16 %v1631_v11, %v1627_v10  ;;  %v1771_v17 = vpack.c.bf16 %v1634_v14, %v1630_v12  ;;  %v1633_v18 = vld [vmem:[%s2781_s1 + $0xb0] sm:$0xff]  ;;  %v1636_v19 = vld [vmem:[%s2781_s1 + $0xc8] sm:$0xff]  ;;  %v576_v36 = vrot.slane %v16_v16, 2  ;;  %v2107_v57 = vsel %vm572_vm0, %v583_v50, %v584_v53 }
   0x7   :  { %1764 = vmatprep.subr.bf16.mxu0 %v1763_v9  ;;  %v1773_v20 = vpack.c.bf16 %v1633_v18, %v1629_v15  ;;  %v1640_v21 = vld [vmem:[%s2781_s1 + $0xe8] sm:$0xff]  ;;  %v1635_v22 = vld [vmem:[%s2781_s1 + $0xc0] sm:$0xff]  ;;  %v1638_v26 = vld [vmem:[%s2781_s1 + $0xd8] sm:$0xff] }
   0x8   :  { %1766 = vmatpush1.bf16.msra.mxu0 %v1765_v13  ;;  %v1639_v23 = vld [vmem:[%s2781_s1 + $0xe0] sm:$0xff]  ;;  %1772 = vmatprep.subr.bf16.mxu1 %v1771_v17  ;;  %v1767_v24 = vpack.c.bf16 %v1640_v21, %v1636_v19  ;;  %v1642_v27 = vld [vmem:[%s2781_s1 + $0xf8] sm:$0xff]  ;;  %v1637_v28 = vld [vmem:[%s2781_s1 + $0xd0] sm:$0xff]  ;;  %v2080_v46 = vsel %vm572_vm0, %v574_v35, %v576_v36 }
   0x9   :  { %v1769_v25 = vpack.c.bf16 %v1639_v23, %v1635_v22  ;;  %v1775_v29 = vpack.c.bf16 %v1642_v27, %v1638_v26  ;;  %v1641_v30 = vld [vmem:[%s2781_s1 + $0xf0] sm:$0xff]  ;;  %v27_v31 = vld [vmem:[%s2781_s1 + $0x8] sm:$0xff]  ;;  %1774 = vmatpush1.bf16.msra.mxu1 %v1773_v20  ;;  %v29_v41 = vld [vmem:[%s2781_s1 + $0x18] sm:$0xff] }
   0xa   :  { %75 = vrot.lane.b32.xlu0 %v1984_v7, %s1927_s16  ;;  %77 = vrot.lane.b32.xlu1 %v1989_v8, %s1927_s16  ;;  %v2050_v32 = vld [vmem:[%s2780_s0 + $0x48] sm:$0xff]  ;;  %v2055_v33 = vld [vmem:[%s2780_s0 + $0x50] sm:$0xff]  ;;  %v1777_v37 = vpack.c.bf16 %v1641_v30, %v1637_v28 }
   0xb   :  { %1768 = vmatprep.subr.bf16.mxu0 %v1767_v24  ;;  %v31_v38 = vld [vmem:[%s2781_s1 + $0x28] sm:$0xff]  ;;  %1776 = vmatprep.subr.bf16.mxu1 %v1775_v29  ;;  %v33_v42 = vld [vmem:[%s2781_s1 + $0x38] sm:$0xff]  ;;  %v22_v49 = vld [vmem:[%s2780_s0 + $0x40] sm:$0x3]  ;;  %v588_v56 = vrot.slane %v2050_v32, 2  ;;  %v589_v59 = vrot.slane %v2055_v33, 2 }
   0xc   :  { %v19_v39 = vld [vmem:[%s2780_s0 + $0x28] sm:$0x3]  ;;  %1770 = vmatpush1.bf16.msra.mxu0 %v1769_v25  ;;  %v1779_v40 = vpack.c.bf16 %v31_v38, %v27_v31  ;;  %v1787_v43 = vpack.c.bf16 %v33_v42, %v29_v41  ;;  %v586_v54 = vrot.slane %v22_v49, 2  ;;  %v25_v55 = vld [vmem:[%s2780_s0 + $0x58] sm:$0x3]  ;;  %v26_v63 = vld [vmem:[%s2781_s1] sm:$0xff] }
   0xd   :  { %v581_v48 = vrot.slane %v19_v39, 2  ;;  %1778 = vmatpush1.bf16.msra.mxu1 %v1777_v37  ;;  %v591_v60 = vrot.slane %v25_v55, 2  ;;  %v2118_v61 = vsel %vm572_vm0, %v588_v56, %v589_v59  ;;  %v30_v5 = vld [vmem:[%s2781_s1 + $0x20] sm:$0xff]  ;;  %v28_v6 = vld [vmem:[%s2781_s1 + $0x10] sm:$0xff]  ;;  %v35_v10 = vld [vmem:[%s2781_s1 + $0x48] sm:$0xff] }
   0xe   :  { %79 = vrot.lane.b32.xlu0 %v2050_v32, %s1927_s16  ;;  %81 = vrot.lane.b32.xlu1 %v2055_v33, %s1927_s16  ;;  %v2110_v58 = vsel %vm572_vm0, %v584_v53, %v586_v54  ;;  %v32_v9 = vld [vmem:[%s2781_s1 + $0x30] sm:$0xff]  ;;  %v39_v11 = vld [vmem:[%s2781_s1 + $0x68] sm:$0xff]  ;;  %v1781_v14 = vpack.c.bf16 %v30_v5, %v26_v63 }
   0xf   :  { %1780 = vmatprep.subr.bf16.mxu0 %v1779_v40  ;;  %1788 = vmatprep.subr.bf16.mxu1 %v1787_v43  ;;  %v2095_v52 = vsel %vm572_vm0, %v579_v47, %v581_v48  ;;  %v2121_v62 = vsel %vm572_vm0, %v589_v59, %v591_v60  ;;  %v37_v12 = vld [vmem:[%s2781_s1 + $0x58] sm:$0xff]  ;;  %v1789_v15 = vpack.c.bf16 %v32_v9, %v28_v6  ;;  %v34_v16 = vld [vmem:[%s2781_s1 + $0x40] sm:$0xff]  ;;  %v36_v21 = vld [vmem:[%s2781_s1 + $0x50] sm:$0xff] }
  0x10   :  { %v41_v13 = vld [vmem:[%s2781_s1 + $0x78] sm:$0xff]  ;;  %v38_v17 = vld [vmem:[%s2781_s1 + $0x60] sm:$0xff]  ;;  %v1783_v19 = vpack.c.bf16 %v39_v11, %v35_v10  ;;  %v40_v22 = vld [vmem:[%s2781_s1 + $0x70] sm:$0xff] }
  0x11   :  { %v1791_v20 = vpack.c.bf16 %v41_v13, %v37_v12  ;;  %v1676_v23 = vld [vmem:[%s2781_s1 + $0x108] sm:$0xff]  ;;  %v1678_v25 = vld [vmem:[%s2781_s1 + $0x118] sm:$0xff]  ;;  %v1785_v27 = vpack.c.bf16 %v38_v17, %v34_v16  ;;  %v1793_v28 = vpack.c.bf16 %v40_v22, %v36_v21  ;;  %v1675_v40 = vld [vmem:[%s2781_s1 + $0x100] sm:$0xff] }
  0x12   :  { %901 = vrot.lane.b32.xlu0 %v2077_v45, %s1927_s16  ;;  %903 = vrot.lane.b32.xlu1 %v2080_v46, %s1927_s16  ;;  %v1680_v24 = vld [vmem:[%s2781_s1 + $0x128] sm:$0xff]  ;;  %v1682_v26 = vld [vmem:[%s2781_s1 + $0x138] sm:$0xff] }
  0x13   :  { %v1795_v31 = vpack.c.bf16 %v1680_v24, %v1676_v23  ;;  %v1803_v34 = vpack.c.bf16 %v1682_v26, %v1678_v25  ;;  %v1679_v41 = vld [vmem:[%s2781_s1 + $0x120] sm:$0xff]  ;;  %v1677_v42 = vld [vmem:[%s2781_s1 + $0x110] sm:$0xff]  ;;  %v1684_v44 = vld [vmem:[%s2781_s1 + $0x148] sm:$0xff] }
  0x14   :  { %v1681_v43 = vld [vmem:[%s2781_s1 + $0x130] sm:$0xff]  ;;  %v1688_v47 = vld [vmem:[%s2781_s1 + $0x168] sm:$0xff]  ;;  %v1686_v48 = vld [vmem:[%s2781_s1 + $0x158] sm:$0xff]  ;;  %v1797_v50 = vpack.c.bf16 %v1679_v41, %v1675_v40 }
  0x15   :  { %v1690_v49 = vld [vmem:[%s2781_s1 + $0x178] sm:$0xff]  ;;  %v1805_v53 = vpack.c.bf16 %v1681_v43, %v1677_v42  ;;  %v1683_v54 = vld [vmem:[%s2781_s1 + $0x140] sm:$0xff]  ;;  %v1799_v56 = vpack.c.bf16 %v1688_v47, %v1684_v44  ;;  %v1685_v60 = vld [vmem:[%s2781_s1 + $0x150] sm:$0xff] }
  0x16   :  { %905 = vrot.lane.b32.xlu0 %v2092_v51, %s1927_s16  ;;  %907 = vrot.lane.b32.xlu1 %v2095_v52, %s1927_s16  ;;  %v1687_v55 = vld [vmem:[%s2781_s1 + $0x160] sm:$0xff]  ;;  %v1807_v59 = vpack.c.bf16 %v1690_v49, %v1686_v48  ;;  %v1689_v63 = vld [vmem:[%s2781_s1 + $0x170] sm:$0xff] }
  0x17   :  { %v1708_v5 = vld [vmem:[%s2781_s1 + $0x188] sm:$0xff]  ;;  %v1710_v9 = vld [vmem:[%s2781_s1 + $0x198] sm:$0xff]  ;;  %v1801_v11 = vpack.c.bf16 %v1687_v55, %v1683_v54  ;;  %v1717_v21 = vld [vmem:[%s2781_s1 + $0x1d0] sm:$0xff] }
  0x18   :  { %v1712_v6 = vld [vmem:[%s2781_s1 + $0x1a8] sm:$0xff]  ;;  %v1714_v10 = vld [vmem:[%s2781_s1 + $0x1b8] sm:$0xff]  ;;  %v1721_v22 = vld [vmem:[%s2781_s1 + $0x1f0] sm:$0xff] }
  0x19   :  { %v1811_v12 = vpack.c.bf16 %v1712_v6, %v1708_v5  ;;  %v1819_v13 = vpack.c.bf16 %v1714_v10, %v1710_v9  ;;  %v1825_v24 = vpack.c.bf16 %v1721_v22, %v1717_v21 }
  0x1a   :  { %909 = vrot.lane.b32.xlu0 %v2107_v57, %s1927_s16  ;;  %911 = vrot.lane.b32.xlu1 %v2110_v58, %s1927_s16 }
  0x1e   :  { %913 = vrot.lane.b32.xlu0 %v2118_v61, %s1927_s16  ;;  %915 = vrot.lane.b32.xlu1 %v2121_v62, %s1927_s16 }
  0x74   :  { %v68_v18 = vpop.permute.xlu0 %67  ;;  %v72_v30 = vpop.permute.xlu1 %71 }
  0x75   :  { %1643 = vmatmul.mubr.msk.f32.vlgmr.msra.gmra.mrb[0].mxu0 %vm83_vm1, %v68_v18  ;;  %1651 = vmatmul.mubr.msk.f32.vlgmr.msra.gmra.mrb[0].mxu1 %vm83_vm1, %v68_v18 }
  0x76   :  { %1782 = vmatpush1.bf16.msra.mxu0 %v1781_v14  ;;  %170 = vmatprep.mubr.f32.mxu0 %v1926_v2  ;;  %v1718_v14 = vld [vmem:[%s2781_s1 + $0x1d8] sm:$0xff] }
  0x77   :  { %283 = vmatprep.mubr.f32.mxu1 %v1926_v2  ;;  %1790 = vmatpush1.bf16.msra.mxu1 %v1789_v15  ;;  %v1722_v15 = vld [vmem:[%s2781_s1 + $0x1f8] sm:$0xff] }
  0x78   :  { %v70_v29 = vpop.permute.xlu0 %69  ;;  %1784 = vmatprep.subr.bf16.mxu0 %v1783_v19  ;;  %1792 = vmatprep.subr.bf16.mxu1 %v1791_v20  ;;  %v74_v35 = vpop.permute.xlu1 %73  ;;  %v1719_v19 = vld [vmem:[%s2781_s1 + $0x1e0] sm:$0xff]  ;;  %v1823_v20 = vpack.c.bf16 %v1722_v15, %v1718_v14 }
  0x79   :  { %1644 = vmatmul.mubr.msk.f32.gmra.mrb[2].mxu0 %vm83_vm1, %v70_v29  ;;  %1652 = vmatmul.mubr.msk.f32.gmra.mrb[2].mxu1 %vm83_vm1, %v70_v29 }
  0x7a   :  { %176 = vmatprep.mubr.f32.mxu0 %v1926_v2  ;;  %289 = vmatprep.mubr.f32.mxu1 %v1926_v2 }
  0x7b   :  { %1786 = vmatpush1.bf16.msra.mxu0 %v1785_v27  ;;  %1794 = vmatpush1.bf16.msra.mxu1 %v1793_v28 }
  0x7c   :  { %1796 = vmatprep.subr.bf16.mxu0 %v1795_v31  ;;  %1804 = vmatprep.subr.bf16.mxu1 %v1803_v34  ;;  %v76_v36 = vpop.permute.xlu0 %75  ;;  %v78_v37 = vpop.permute.xlu1 %77 }
  0x7d   :  { %1645 = vmatmul.mubr.msk.f32.gmra.mrb[4].mxu0 %vm83_vm1, %v72_v30  ;;  %1653 = vmatmul.mubr.msk.f32.gmra.mrb[4].mxu1 %vm83_vm1, %v72_v30 }
  0x7e   :  { %182 = vmatprep.mubr.f32.mxu0 %v1926_v2  ;;  %295 = vmatprep.mubr.f32.mxu1 %v1926_v2 }
  0x80   :  { %v80_v38 = vpop.permute.xlu0 %79  ;;  %v82_v39 = vpop.permute.xlu1 %81 }
  0x81   :  { %1646 = vmatmul.mubr.msk.f32.gmra.mrb[6].mxu0 %vm83_vm1, %v74_v35  ;;  %1654 = vmatmul.mubr.msk.f32.gmra.mrb[6].mxu1 %vm83_vm1, %v74_v35 }
  0x82   :  { %188 = vmatprep.mubr.f32.mxu0 %v1926_v2  ;;  %301 = vmatprep.mubr.f32.mxu1 %v1926_v2 }
  0x85   :  { %1647 = vmatmul.mubr.msk.f32.gmra.mrb[8].mxu0 %vm83_vm1, %v76_v36  ;;  %1655 = vmatmul.mubr.msk.f32.gmra.mrb[8].mxu1 %vm83_vm1, %v76_v36 }
  0x86   :  { %194 = vmatprep.mubr.f32.mxu0 %v1926_v2  ;;  %307 = vmatprep.mubr.f32.mxu1 %v1926_v2 }
  0x89   :  { %1648 = vmatmul.mubr.msk.f32.gmra.mrb[10].mxu0 %vm83_vm1, %v78_v37  ;;  %1656 = vmatmul.mubr.msk.f32.gmra.mrb[10].mxu1 %vm83_vm1, %v78_v37 }
  0x8a   :  { %200 = vmatprep.mubr.f32.mxu0 %v1926_v2  ;;  %313 = vmatprep.mubr.f32.mxu1 %v1926_v2 }
  0x8d   :  { %1649 = vmatmul.mubr.msk.f32.gmra.mrb[12].mxu0 %vm83_vm1, %v80_v38  ;;  %1657 = vmatmul.mubr.msk.f32.gmra.mrb[12].mxu1 %vm83_vm1, %v80_v38 }
  0x8e   :  { %206 = vmatprep.mubr.f32.mxu0 %v1926_v2  ;;  %319 = vmatprep.mubr.f32.mxu1 %v1926_v2 }
  0x91   :  { %1650 = vmatmul.mubr.msk.f32.gmra.mrb[14].mxu0 %vm83_vm1, %v82_v39  ;;  %1658 = vmatmul.mubr.msk.f32.gmra.mrb[14].mxu1 %vm83_vm1, %v82_v39 }
  0x92   :  { %406 = vmatprep.mubr.f32.mxu0 %v1926_v2  ;;  %519 = vmatprep.mubr.f32.mxu1 %v1926_v2 }
  0x95   :  { %1659 = vmatmul.mubr.msk.f32.vlgmr.msra.gmra.mrb[0].mxu0 %vm83_vm1, %v1952_v0  ;;  %1667 = vmatmul.mubr.msk.f32.vlgmr.msra.gmra.mrb[0].mxu1 %vm83_vm1, %v1952_v0  ;;  %v1809_v0 = vpack.c.bf16 %v1689_v63, %v1685_v60 }
  0x96   :  { %1798 = vmatpush1.bf16.msra.mxu0 %v1797_v50  ;;  %412 = vmatprep.mubr.f32.mxu0 %v1926_v2 }
  0x97   :  { %525 = vmatprep.mubr.f32.mxu1 %v1926_v2  ;;  %1806 = vmatpush1.bf16.msra.mxu1 %v1805_v53 }
  0x98   :  { %1800 = vmatprep.subr.bf16.mxu0 %v1799_v56  ;;  %1808 = vmatprep.subr.bf16.mxu1 %v1807_v59 }
  0x99   :  { %1660 = vmatmul.mubr.msk.f32.gmra.mrb[2].mxu0 %vm83_vm1, %v1968_v3  ;;  %1668 = vmatmul.mubr.msk.f32.gmra.mrb[2].mxu1 %vm83_vm1, %v1968_v3  ;;  %v1711_v3 = vld [vmem:[%s2781_s1 + $0x1a0] sm:$0xff] }
  0x9a   :  { %418 = vmatprep.mubr.f32.mxu0 %v1926_v2  ;;  %531 = vmatprep.mubr.f32.mxu1 %v1926_v2 }
  0x9b   :  { %1802 = vmatpush1.bf16.msra.mxu0 %v1801_v11  ;;  %1810 = vmatpush1.bf16.msra.mxu1 %v1809_v0  ;;  %v1535_v11 = vlaneseq }
  0x9c   :  { %1812 = vmatprep.subr.bf16.mxu0 %v1811_v12  ;;  %1820 = vmatprep.subr.bf16.mxu1 %v1819_v13 }
  0x9d   :  { %1661 = vmatmul.mubr.msk.f32.gmra.mrb[4].mxu0 %vm83_vm1, %v1957_v1  ;;  %1669 = vmatmul.mubr.msk.f32.gmra.mrb[4].mxu1 %vm83_vm1, %v1957_v1  ;;  %v1707_v1 = vld [vmem:[%s2781_s1 + $0x180] sm:$0xff] }
  0x9e   :  { %424 = vmatprep.mubr.f32.mxu0 %v1926_v2  ;;  %537 = vmatprep.mubr.f32.mxu1 %v1926_v2  ;;  %v1813_v16 = vpack.c.bf16 %v1711_v3, %v1707_v1  ;;  %v1536_v1 = vshrl.u32 %v1535_v11, 7 }
  0xa0   :  { %v1537_v14 = vsub.s32 0, %v1536_v1  ;;  %v1545_v21 = vsub.s32 2, %v1536_v1  ;;  %v1549_v22 = vsub.s32 3, %v1536_v1 }
  0xa1   :  { %1662 = vmatmul.mubr.msk.f32.gmra.mrb[6].mxu0 %vm83_vm1, %v1973_v4  ;;  %1670 = vmatmul.mubr.msk.f32.gmra.mrb[6].mxu1 %vm83_vm1, %v1973_v4  ;;  %v1709_v4 = vld [vmem:[%s2781_s1 + $0x190] sm:$0xff] }
  0xa2   :  { %430 = vmatprep.mubr.f32.mxu0 %v1926_v2  ;;  %543 = vmatprep.mubr.f32.mxu1 %v1926_v2 }
  0xa5   :  { %1663 = vmatmul.mubr.msk.f32.gmra.mrb[8].mxu0 %vm83_vm1, %v1984_v7  ;;  %1671 = vmatmul.mubr.msk.f32.gmra.mrb[8].mxu1 %vm83_vm1, %v1984_v7  ;;  %v1713_v7 = vld [vmem:[%s2781_s1 + $0x1b0] sm:$0xff] }
  0xa6   :  { %436 = vmatprep.mubr.f32.mxu0 %v1926_v2  ;;  %549 = vmatprep.mubr.f32.mxu1 %v1926_v2  ;;  %v1821_v17 = vpack.c.bf16 %v1713_v7, %v1709_v4 }
  0xa9   :  { %1664 = vmatmul.mubr.msk.f32.gmra.mrb[10].mxu0 %vm83_vm1, %v1989_v8  ;;  %1672 = vmatmul.mubr.msk.f32.gmra.mrb[10].mxu1 %vm83_vm1, %v1989_v8  ;;  %v1716_v8 = vld [vmem:[%s2781_s1 + $0x1c8] sm:$0xff] }
  0xaa   :  { %442 = vmatprep.mubr.f32.mxu0 %v1926_v2  ;;  %555 = vmatprep.mubr.f32.mxu1 %v1926_v2 }
  0xad   :  { %1665 = vmatmul.mubr.msk.f32.gmra.mrb[12].mxu0 %vm83_vm1, %v2050_v32  ;;  %1673 = vmatmul.mubr.msk.f32.gmra.mrb[12].mxu1 %vm83_vm1, %v2050_v32  ;;  %v1720_v32 = vld [vmem:[%s2781_s1 + $0x1e8] sm:$0xff] }
  0xae   :  { %448 = vmatprep.mubr.f32.mxu0 %v1926_v2  ;;  %561 = vmatprep.mubr.f32.mxu1 %v1926_v2  ;;  %v1815_v18 = vpack.c.bf16 %v1720_v32, %v1716_v8 }
  0xb1   :  { %1666 = vmatmul.mubr.msk.f32.gmra.mrb[14].mxu0 %vm83_vm1, %v2055_v33  ;;  %1674 = vmatmul.mubr.msk.f32.gmra.mrb[14].mxu1 %vm83_vm1, %v2055_v33  ;;  %v1715_v33 = vld [vmem:[%s2781_s1 + $0x1c0] sm:$0xff]  ;;  %s1928_s1 = smov 96  }
  0xb2   :  { %690 = vmatprep.mubr.f32.mxu0 %v1926_v2  ;;  %803 = vmatprep.mubr.f32.mxu1 %v1926_v2  ;;  %v1817_v23 = vpack.c.bf16 %v1719_v19, %v1715_v33 }
  0xb5   :  { %1691 = vmatmul.mubr.msk.f32.vlgmr.msra.gmra.mrb[0].mxu0 %vm83_vm1, %v2077_v45  ;;  %1699 = vmatmul.mubr.msk.f32.vlgmr.msra.gmra.mrb[0].mxu1 %vm83_vm1, %v2077_v45  ;;  %v902_v45 = vpop.permute.xlu0 %901 }
  0xb6   :  { %1814 = vmatpush1.bf16.msra.mxu0 %v1813_v16  ;;  %696 = vmatprep.mubr.f32.mxu0 %v1926_v2 }
  0xb7   :  { %809 = vmatprep.mubr.f32.mxu1 %v1926_v2  ;;  %1822 = vmatpush1.bf16.msra.mxu1 %v1821_v17  ;;  %v1533_v17 = vld [vmem:[%s2782_s2] sm:$0xf] }
  0xb8   :  { %1816 = vmatprep.subr.bf16.mxu0 %v1815_v18  ;;  %1824 = vmatprep.subr.bf16.mxu1 %v1823_v20  ;;  %v1541_v18 = vsub.s32 1, %v1536_v1 }
  0xb9   :  { %1692 = vmatmul.mubr.msk.f32.gmra.mrb[2].mxu0 %vm83_vm1, %v2080_v46  ;;  %1700 = vmatmul.mubr.msk.f32.gmra.mrb[2].mxu1 %vm83_vm1, %v2080_v46  ;;  %v904_v46 = vpop.permute.xlu1 %903 }
  0xba   :  { %702 = vmatprep.mubr.f32.mxu0 %v1926_v2  ;;  %815 = vmatprep.mubr.f32.mxu1 %v1926_v2 }
  0xbb   :  { %1818 = vmatpush1.bf16.msra.mxu0 %v1817_v23  ;;  %1826 = vmatpush1.bf16.msra.mxu1 %v1825_v24 }
  0xbd   :  { %1693 = vmatmul.mubr.msk.f32.gmra.mrb[4].mxu0 %vm83_vm1, %v2092_v51  ;;  %1701 = vmatmul.mubr.msk.f32.gmra.mrb[4].mxu1 %vm83_vm1, %v2092_v51  ;;  %v906_v51 = vpop.permute.xlu0 %905 }
  0xbe   :  { %708 = vmatprep.mubr.f32.mxu0 %v1926_v2  ;;  %821 = vmatprep.mubr.f32.mxu1 %v1926_v2 }
  0xc1   :  { %1694 = vmatmul.mubr.msk.f32.gmra.mrb[6].mxu0 %vm83_vm1, %v2095_v52  ;;  %1702 = vmatmul.mubr.msk.f32.gmra.mrb[6].mxu1 %vm83_vm1, %v2095_v52  ;;  %v908_v52 = vpop.permute.xlu1 %907 }
  0xc2   :  { %714 = vmatprep.mubr.f32.mxu0 %v1926_v2  ;;  %827 = vmatprep.mubr.f32.mxu1 %v1926_v2 }
  0xc5   :  { %1695 = vmatmul.mubr.msk.f32.gmra.mrb[8].mxu0 %vm83_vm1, %v2107_v57  ;;  %1703 = vmatmul.mubr.msk.f32.gmra.mrb[8].mxu1 %vm83_vm1, %v2107_v57  ;;  %v910_v57 = vpop.permute.xlu0 %909 }
  0xc6   :  { %720 = vmatprep.mubr.f32.mxu0 %v1926_v2  ;;  %833 = vmatprep.mubr.f32.mxu1 %v1926_v2 }
  0xc9   :  { %1696 = vmatmul.mubr.msk.f32.gmra.mrb[10].mxu0 %vm83_vm1, %v2110_v58  ;;  %1704 = vmatmul.mubr.msk.f32.gmra.mrb[10].mxu1 %vm83_vm1, %v2110_v58  ;;  %v912_v58 = vpop.permute.xlu1 %911 }
  0xca   :  { %726 = vmatprep.mubr.f32.mxu0 %v1926_v2  ;;  %839 = vmatprep.mubr.f32.mxu1 %v1926_v2 }
  0xcd   :  { %1697 = vmatmul.mubr.msk.f32.gmra.mrb[12].mxu0 %vm83_vm1, %v2118_v61  ;;  %1705 = vmatmul.mubr.msk.f32.gmra.mrb[12].mxu1 %vm83_vm1, %v2118_v61  ;;  %v914_v61 = vpop.permute.xlu0 %913 }
  0xce   :  { %732 = vmatprep.mubr.f32.mxu0 %v1926_v2  ;;  %845 = vmatprep.mubr.f32.mxu1 %v1926_v2 }
  0xd1   :  { %1698 = vmatmul.mubr.msk.f32.gmra.mrb[14].mxu0 %vm83_vm1, %v2121_v62  ;;  %1706 = vmatmul.mubr.msk.f32.gmra.mrb[14].mxu1 %vm83_vm1, %v2121_v62  ;;  %v916_v62 = vpop.permute.xlu1 %915 }
  0xd2   :  { %997 = vmatprep.mubr.f32.mxu0 %v1926_v2  ;;  %1110 = vmatprep.mubr.f32.mxu1 %v1926_v2 }
  0xd5   :  { %1723 = vmatmul.mubr.msk.f32.vlgmr.msra.gmra.mrb[0].mxu0 %vm83_vm1, %v902_v45  ;;  %1731 = vmatmul.mubr.msk.f32.vlgmr.msra.gmra.mrb[0].mxu1 %vm83_vm1, %v902_v45 }
  0xd6   :  { %1003 = vmatprep.mubr.f32.mxu0 %v1926_v2  ;;  %1116 = vmatprep.mubr.f32.mxu1 %v1926_v2 }
  0xd9   :  { %1724 = vmatmul.mubr.msk.f32.gmra.mrb[2].mxu0 %vm83_vm1, %v904_v46  ;;  %1732 = vmatmul.mubr.msk.f32.gmra.mrb[2].mxu1 %vm83_vm1, %v904_v46 }
  0xda   :  { %1009 = vmatprep.mubr.f32.mxu0 %v1926_v2  ;;  %1122 = vmatprep.mubr.f32.mxu1 %v1926_v2 }
  0xdd   :  { %1725 = vmatmul.mubr.msk.f32.gmra.mrb[4].mxu0 %vm83_vm1, %v906_v51  ;;  %1733 = vmatmul.mubr.msk.f32.gmra.mrb[4].mxu1 %vm83_vm1, %v906_v51 }
  0xde   :  { %1015 = vmatprep.mubr.f32.mxu0 %v1926_v2  ;;  %1128 = vmatprep.mubr.f32.mxu1 %v1926_v2 }
  0xe1   :  { %1726 = vmatmul.mubr.msk.f32.gmra.mrb[6].mxu0 %vm83_vm1, %v908_v52  ;;  %1734 = vmatmul.mubr.msk.f32.gmra.mrb[6].mxu1 %vm83_vm1, %v908_v52  ;;  %v2561_v52 = vrot.slane %v1533_v17, %v1537_v14 }
  0xe2   :  { %1021 = vmatprep.mubr.f32.mxu0 %v1926_v2  ;;  %1134 = vmatprep.mubr.f32.mxu1 %v1926_v2 }
  0xe5   :  { %1727 = vmatmul.mubr.msk.f32.gmra.mrb[8].mxu0 %vm83_vm1, %v910_v57  ;;  %1735 = vmatmul.mubr.msk.f32.gmra.mrb[8].mxu1 %vm83_vm1, %v910_v57 }
  0xe6   :  { %1027 = vmatprep.mubr.f32.mxu0 %v1926_v2  ;;  %1140 = vmatprep.mubr.f32.mxu1 %v1926_v2 }
  0xe9   :  { %1728 = vmatmul.mubr.msk.f32.gmra.mrb[10].mxu0 %vm83_vm1, %v912_v58  ;;  %1736 = vmatmul.mubr.msk.f32.gmra.mrb[10].mxu1 %vm83_vm1, %v912_v58 }
  0xea   :  { %1033 = vmatprep.mubr.f32.mxu0 %v1926_v2  ;;  %1146 = vmatprep.mubr.f32.mxu1 %v1926_v2 }
  0xed   :  { %1729 = vmatmul.mubr.msk.f32.gmra.mrb[12].mxu0 %vm83_vm1, %v914_v61  ;;  %1737 = vmatmul.mubr.msk.f32.gmra.mrb[12].mxu1 %vm83_vm1, %v914_v61 }
  0xee   :  { %1039 = vmatprep.mubr.f32.mxu0 %v1926_v2  ;;  %1152 = vmatprep.mubr.f32.mxu1 %v1926_v2 }
  0xf1   :  { %1730 = vmatmul.mubr.msk.f32.gmra.mrb[14].mxu0 %vm83_vm1, %v916_v62  ;;  %1738 = vmatmul.mubr.msk.f32.gmra.mrb[14].mxu1 %vm83_vm1, %v916_v62 }
 0x1a8   :  { %v2417_v25 = vpop.f32.mrb[0].mxu0  ;;  %v2419_v26 = vpop.f32.mrb[0].mxu1 }
 0x1a9   :  { %v2421_v27 = vpop.f32.mrb[1].mxu1  ;;  %1223 = vrot.lane.b32.xlu0 %v2417_v25, %s1928_s1  ;;  %v2425_v28 = vpop.f32.mrb[1].mxu0 }
 0x1aa   :  { %1225 = vrot.lane.b32.xlu1 %v2425_v28, %s1928_s1 }
 0x1ac   :  { %v2429_v2 = vpop.f32.mrb[2].mxu0  ;;  %v2431_v29 = vpop.f32.mrb[2].mxu1 }
 0x1ad   :  { %v2433_v30 = vpop.f32.mrb[3].mxu1  ;;  %1227 = vrot.lane.b32.xlu0 %v2419_v26, %s1928_s1  ;;  %v2437_v31 = vpop.f32.mrb[3].mxu0 }
 0x1ae   :  { %1229 = vrot.lane.b32.xlu1 %v2421_v27, %s1928_s1 }
 0x1b0   :  { %v2441_v34 = vpop.f32.mrb[4].mxu0  ;;  %v2443_v35 = vpop.f32.mrb[4].mxu1 }
 0x1b1   :  { %v2445_v36 = vpop.f32.mrb[5].mxu1  ;;  %1231 = vrot.lane.b32.xlu0 %v2429_v2, %s1928_s1  ;;  %v2449_v37 = vpop.f32.mrb[5].mxu0 }
 0x1b2   :  { %1233 = vrot.lane.b32.xlu1 %v2437_v31, %s1928_s1 }
 0x1b4   :  { %v2453_v38 = vpop.f32.mrb[6].mxu0  ;;  %v2455_v39 = vpop.f32.mrb[6].mxu1 }
 0x1b5   :  { %v2457_v40 = vpop.f32.mrb[7].mxu1  ;;  %1235 = vrot.lane.b32.xlu0 %v2431_v29, %s1928_s1  ;;  %v2461_v41 = vpop.f32.mrb[7].mxu0 }
 0x1b6   :  { %1237 = vrot.lane.b32.xlu1 %v2433_v30, %s1928_s1 }
 0x1b8   :  { %v2465_v42 = vpop.f32.mrb[8].mxu0  ;;  %v2467_v43 = vpop.f32.mrb[8].mxu1 }
 0x1b9   :  { %v2469_v44 = vpop.f32.mrb[9].mxu1  ;;  %1239 = vrot.lane.b32.xlu0 %v2441_v34, %s1928_s1  ;;  %v2473_v47 = vpop.f32.mrb[9].mxu0 }
 0x1ba   :  { %1241 = vrot.lane.b32.xlu1 %v2449_v37, %s1928_s1 }
 0x1bc   :  { %v2477_v48 = vpop.f32.mrb[10].mxu0  ;;  %v2479_v49 = vpop.f32.mrb[10].mxu1 }
 0x1bd   :  { %v2481_v50 = vpop.f32.mrb[11].mxu1  ;;  %1243 = vrot.lane.b32.xlu0 %v2443_v35, %s1928_s1  ;;  %v2485_v53 = vpop.f32.mrb[11].mxu0 }
 0x1be   :  { %1245 = vrot.lane.b32.xlu1 %v2445_v36, %s1928_s1 }
 0x1c0   :  { %v2489_v54 = vpop.f32.mrb[12].mxu0  ;;  %v2491_v55 = vpop.f32.mrb[12].mxu1 }
 0x1c1   :  { %v2493_v56 = vpop.f32.mrb[13].mxu1  ;;  %1247 = vrot.lane.b32.xlu0 %v2453_v38, %s1928_s1  ;;  %v2497_v59 = vpop.f32.mrb[13].mxu0 }
 0x1c2   :  { %1249 = vrot.lane.b32.xlu1 %v2461_v41, %s1928_s1 }
 0x1c4   :  { %v2501_v60 = vpop.f32.mrb[14].mxu0  ;;  %v2503_v63 = vpop.f32.mrb[14].mxu1 }
 0x1c5   :  { %v2505_v5 = vpop.f32.mrb[15].mxu1  ;;  %1251 = vrot.lane.b32.xlu0 %v2455_v39, %s1928_s1  ;;  %v2509_v6 = vpop.f32.mrb[15].mxu0 }
 0x1c6   :  { %1253 = vrot.lane.b32.xlu1 %v2457_v40, %s1928_s1 }
 0x1c9   :  { %1255 = vrot.lane.b32.xlu0 %v2465_v42, %s1928_s1 }
 0x1ca   :  { %1257 = vrot.lane.b32.xlu1 %v2473_v47, %s1928_s1 }
 0x1cd   :  { %1259 = vrot.lane.b32.xlu0 %v2467_v43, %s1928_s1 }
 0x1ce   :  { %1261 = vrot.lane.b32.xlu1 %v2469_v44, %s1928_s1 }
 0x1d1   :  { %1263 = vrot.lane.b32.xlu0 %v2477_v48, %s1928_s1 }
 0x1d2   :  { %1265 = vrot.lane.b32.xlu1 %v2485_v53, %s1928_s1 }
 0x1d5   :  { %1267 = vrot.lane.b32.xlu0 %v2479_v49, %s1928_s1 }
 0x1d6   :  { %1269 = vrot.lane.b32.xlu1 %v2481_v50, %s1928_s1 }
 0x1d9   :  { %1271 = vrot.lane.b32.xlu0 %v2489_v54, %s1928_s1 }
 0x1da   :  { %1273 = vrot.lane.b32.xlu1 %v2497_v59, %s1928_s1 }
 0x1dd   :  { %1275 = vrot.lane.b32.xlu0 %v2491_v55, %s1928_s1 }
 0x1de   :  { %1277 = vrot.lane.b32.xlu1 %v2493_v56, %s1928_s1 }
 0x1e1   :  { %1279 = vrot.lane.b32.xlu0 %v2501_v60, %s1928_s1 }
 0x1e2   :  { %1281 = vrot.lane.b32.xlu1 %v2509_v6, %s1928_s1 }
 0x1e5   :  { %1283 = vrot.lane.b32.xlu0 %v2503_v63, %s1928_s1 }
 0x1e6   :  { %1285 = vrot.lane.b32.xlu1 %v2505_v5, %s1928_s1 }
 0x21b   :  { %v1224_v9 = vpop.permute.xlu0 %1223 }
 0x21c   :  { %v1226_v10 = vpop.permute.xlu1 %1225 }
 0x21d   :  { %v1288_v13 = vsel %vm1287_vm2, %v1224_v9, %v1226_v10 }
 0x21e   :  { %v1344_v7 = vmax.f32 %v2417_v25, %v1288_v13 }
 0x21f   :  { %v1228_v0 = vpop.permute.xlu0 %1227 }
 0x220   :  { %v1230_v12 = vpop.permute.xlu1 %1229  ;;  %v1289_v3 = vsel %vm1287_vm2, %v1226_v10, %v1228_v0  ;;  %v1409_v23 = vrot.slane %v1344_v7, 1 }
 0x221   :  { %v1290_v32 = vsel %vm1287_vm2, %v1228_v0, %v1230_v12  ;;  %v1345_v16 = vmax.f32 %v2425_v28, %v1289_v3  ;;  %v1347_v19 = vmax.f32 %v2421_v27, %v1230_v12  ;;  %v2567_v27 = vrot.slane %v1533_v17, %v1541_v18 }
 0x222   :  { %v1346_v24 = vmax.f32 %v2419_v26, %v1290_v32  ;;  %v2570_v12 = vrot.slane %v1533_v17, %v1545_v21 }
 0x223   :  { %v1232_v4 = vpop.permute.xlu0 %1231  ;;  %v1412_v62 = vrot.slane %v1345_v16, 1  ;;  %v1418_v28 = vrot.slane %v1347_v19, 1 }
 0x224   :  { %v1234_v8 = vpop.permute.xlu1 %1233  ;;  %v1415_v0 = vrot.slane %v1346_v24, 1 }
 0x225   :  { %v1291_v15 = vsel %vm1287_vm2, %v1232_v4, %v1234_v8 }
 0x226   :  { %v2555_v33 = vmax.f32 %v2429_v2, %v1291_v15 }
 0x227   :  { %v1236_v20 = vpop.permute.xlu0 %1235 }
 0x228   :  { %v1410_v45 = vrot.slane %v2555_v33, 1  ;;  %v1292_v46 = vsel %vm1287_vm2, %v1234_v8, %v1236_v20  ;;  %v1238_v51 = vpop.permute.xlu1 %1237 }
 0x229   :  { %v1349_v57 = vmax.f32 %v2437_v31, %v1292_v46  ;;  %v1293_v58 = vsel %vm1287_vm2, %v1236_v20, %v1238_v51  ;;  %v1351_v61 = vmax.f32 %v2433_v30, %v1238_v51  ;;  %v2572_v31 = vrot.slane %v1533_v17, %v1549_v22 }
 0x22a   :  { %v1411_v25 = vsel %vm1408_vm3, %v1409_v23, %v1410_v45  ;;  %v1350_v26 = vmax.f32 %v2431_v29, %v1293_v58 }
 0x22b   :  { %v1501_v2 = vmax.f32 %v1344_v7, %v1411_v25  ;;  %v1413_v9 = vrot.slane %v1349_v57, 1  ;;  %v1419_v10 = vrot.slane %v1351_v61, 1  ;;  %v1240_v11 = vpop.permute.xlu0 %1239 }
 0x22c   :  { %v1416_v13 = vrot.slane %v1350_v26, 1  ;;  %v1242_v1 = vpop.permute.xlu1 %1241 }
 0x22d   :  { %v1555_v30 = vadd.f32 %v2561_v52, %v1501_v2  ;;  %v1414_v3 = vsel %vm1408_vm3, %v1412_v62, %v1413_v9  ;;  %v1420_v4 = vsel %vm1408_vm3, %v1418_v28, %v1419_v10  ;;  %v1294_v29 = vsel %vm1287_vm2, %v1240_v11, %v1242_v1 }
 0x22e   :  { %v1502_v8 = vmax.f32 %v1345_v16, %v1414_v3  ;;  %v1417_v7 = vsel %vm1408_vm3, %v1415_v0, %v1416_v13  ;;  %v1504_v32 = vmax.f32 %v1347_v19, %v1420_v4  ;;  %v1352_v14 = vmax.f32 %v2441_v34, %v1294_v29 }
 0x22f   :  { %1587 = vst [vmem:[%s2783_s3] sm:$0xff] %v1555_v30  ;;  %v1503_v15 = vmax.f32 %v1346_v24, %v1417_v7  ;;  %v1244_v17 = vpop.permute.xlu0 %1243 }
 0x230   :  { %v1556_v18 = vadd.f32 %v2567_v27, %v1502_v8  ;;  %v1558_v20 = vadd.f32 %v2572_v31, %v1504_v32  ;;  %v1421_v21 = vrot.slane %v1352_v14, 1  ;;  %v1295_v22 = vsel %vm1287_vm2, %v1242_v1, %v1244_v17  ;;  %v1246_v23 = vpop.permute.xlu1 %1245 }
 0x231   :  { %v1557_v16 = vadd.f32 %v2570_v12, %v1503_v15  ;;  %v1353_v19 = vmax.f32 %v2449_v37, %v1295_v22  ;;  %v1296_v34 = vsel %vm1287_vm2, %v1244_v17, %v1246_v23  ;;  %v1355_v46 = vmax.f32 %v2445_v36, %v1246_v23 }
 0x232   :  { %1588 = vst [vmem:[%s2783_s3 + $0x8] sm:$0xff] %v1556_v18  ;;  %1590 = vst.msk [vmem:[%s2783_s3 + $0x18] sm:$0xff] %vm1287_vm2, %v1558_v20  ;;  %v1422_v24 = vsel %vm1408_vm3, %v1410_v45, %v1421_v21  ;;  %v1354_v51 = vmax.f32 %v2443_v35, %v1296_v34 }
 0x233   :  { %1589 = vst [vmem:[%s2783_s3 + $0x10] sm:$0xff] %v1557_v16  ;;  %v1505_v37 = vmax.f32 %v2555_v33, %v1422_v24  ;;  %v1423_v36 = vrot.slane %v1353_v19, 1  ;;  %v1427_v58 = vrot.slane %v1355_v46, 1  ;;  %v1248_v62 = vpop.permute.xlu0 %1247 }
 0x234   :  { %v1425_v25 = vrot.slane %v1354_v51, 1  ;;  %v1250_v28 = vpop.permute.xlu1 %1249 }
 0x235   :  { %v1559_v2 = vadd.f32 %v2561_v52, %v1505_v37  ;;  %v1424_v11 = vsel %vm1408_vm3, %v1413_v9, %v1423_v36  ;;  %v1428_v0 = vsel %vm1408_vm3, %v1419_v10, %v1427_v58  ;;  %v1297_v45 = vsel %vm1287_vm2, %v1248_v62, %v1250_v28 }
 0x236   :  { %v1506_v35 = vmax.f32 %v1349_v57, %v1424_v11  ;;  %v1426_v1 = vsel %vm1408_vm3, %v1416_v13, %v1425_v25  ;;  %v1508_v30 = vmax.f32 %v1351_v61, %v1428_v0  ;;  %v1356_v3 = vmax.f32 %v2453_v38, %v1297_v45 }
 0x237   :  { %1591 = vst [vmem:[%s2783_s3 + $0x20] sm:$0x7f] %v1559_v2  ;;  %v1507_v33 = vmax.f32 %v1350_v26, %v1426_v1  ;;  %v1252_v4 = vpop.permute.xlu0 %1251 }
 0x238   :  { %v1560_v29 = vadd.f32 %v2567_v27, %v1506_v35  ;;  %v1562_v9 = vadd.f32 %v2572_v31, %v1508_v30  ;;  %v1429_v10 = vrot.slane %v1356_v3, 1  ;;  %v1298_v8 = vsel %vm1287_vm2, %v1250_v28, %v1252_v4  ;;  %v1254_v57 = vpop.permute.xlu1 %1253 }
 0x239   :  { %v1561_v13 = vadd.f32 %v2570_v12, %v1507_v33  ;;  %v1357_v61 = vmax.f32 %v2461_v41, %v1298_v8  ;;  %v1299_v38 = vsel %vm1287_vm2, %v1252_v4, %v1254_v57  ;;  %v1359_v7 = vmax.f32 %v2457_v40, %v1254_v57 }
 0x23a   :  { %1592 = vst [vmem:[%s2783_s3 + $0x28] sm:$0x7f] %v1560_v29  ;;  %v1430_v26 = vsel %vm1408_vm3, %v1421_v21, %v1429_v10  ;;  %v1358_v32 = vmax.f32 %v2455_v39, %v1299_v38  ;;  %1595 = vst.msk [vmem:[%s2783_s3 + $0x38] sm:$0x7f] %vm1594_vm4, %v1562_v9 }
 0x23b   :  { %1593 = vst [vmem:[%s2783_s3 + $0x30] sm:$0x7f] %v1561_v13  ;;  %v1509_v41 = vmax.f32 %v1352_v14, %v1430_v26  ;;  %v1431_v15 = vrot.slane %v1357_v61, 1  ;;  %v1435_v40 = vrot.slane %v1359_v7, 1  ;;  %v1256_v17 = vpop.permute.xlu0 %1255 }
 0x23c   :  { %v1433_v18 = vrot.slane %v1358_v32, 1  ;;  %v1258_v20 = vpop.permute.xlu1 %1257 }
 0x23d   :  { %v1563_v22 = vadd.f32 %v2561_v52, %v1509_v41  ;;  %v1432_v21 = vsel %vm1408_vm3, %v1423_v36, %v1431_v15  ;;  %v1436_v39 = vsel %vm1408_vm3, %v1427_v58, %v1435_v40  ;;  %v1300_v23 = vsel %vm1287_vm2, %v1256_v17, %v1258_v20 }
 0x23e   :  { %v1510_v16 = vmax.f32 %v1353_v19, %v1432_v21  ;;  %v1434_v34 = vsel %vm1408_vm3, %v1425_v25, %v1433_v18  ;;  %v1512_v24 = vmax.f32 %v1355_v46, %v1436_v39  ;;  %v1360_v37 = vmax.f32 %v2465_v42, %v1300_v23 }
 0x23f   :  { %1739 = vst [vmem:[%s2783_s3 + $0x40] sm:$0xff] %v1563_v22  ;;  %v1511_v14 = vmax.f32 %v1354_v51, %v1434_v34  ;;  %v1260_v62 = vpop.permute.xlu0 %1259 }
 0x240   :  { %v1564_v28 = vadd.f32 %v2567_v27, %v1510_v16  ;;  %v1566_v36 = vadd.f32 %v2572_v31, %v1512_v24  ;;  %v1437_v2 = vrot.slane %v1360_v37, 1  ;;  %v1301_v58 = vsel %vm1287_vm2, %v1258_v20, %v1260_v62  ;;  %v1262_v11 = vpop.permute.xlu1 %1261 }
 0x241   :  { %v1565_v19 = vadd.f32 %v2570_v12, %v1511_v14  ;;  %v1361_v46 = vmax.f32 %v2473_v47, %v1301_v58  ;;  %v1302_v42 = vsel %vm1287_vm2, %v1260_v62, %v1262_v11  ;;  %v1363_v25 = vmax.f32 %v2469_v44, %v1262_v11 }
 0x242   :  { %1740 = vst [vmem:[%s2783_s3 + $0x48] sm:$0xff] %v1564_v28  ;;  %1742 = vst.msk [vmem:[%s2783_s3 + $0x58] sm:$0xff] %vm1287_vm2, %v1566_v36  ;;  %v1438_v51 = vsel %vm1408_vm3, %v1429_v10, %v1437_v2  ;;  %v1362_v0 = vmax.f32 %v2467_v43, %v1302_v42 }
 0x243   :  { %1741 = vst [vmem:[%s2783_s3 + $0x50] sm:$0xff] %v1565_v19  ;;  %v1513_v47 = vmax.f32 %v1356_v3, %v1438_v51  ;;  %v1439_v45 = vrot.slane %v1361_v46, 1  ;;  %v1443_v44 = vrot.slane %v1363_v25, 1  ;;  %v1264_v35 = vpop.permute.xlu0 %1263 }
 0x244   :  { %v1441_v1 = vrot.slane %v1362_v0, 1  ;;  %v1266_v30 = vpop.permute.xlu1 %1265 }
 0x245   :  { %v1567_v33 = vadd.f32 %v2561_v52, %v1513_v47  ;;  %v1440_v4 = vsel %vm1408_vm3, %v1431_v15, %v1439_v45  ;;  %v1444_v29 = vsel %vm1408_vm3, %v1435_v40, %v1443_v44  ;;  %v1303_v9 = vsel %vm1287_vm2, %v1264_v35, %v1266_v30 }
 0x246   :  { %v1514_v10 = vmax.f32 %v1357_v61, %v1440_v4  ;;  %v1442_v43 = vsel %vm1408_vm3, %v1433_v18, %v1441_v1  ;;  %v1516_v8 = vmax.f32 %v1359_v7, %v1444_v29  ;;  %v1364_v57 = vmax.f32 %v2477_v48, %v1303_v9 }
 0x247   :  { %1743 = vst [vmem:[%s2783_s3 + $0x60] sm:$0x7f] %v1567_v33  ;;  %v1515_v3 = vmax.f32 %v1358_v32, %v1442_v43  ;;  %v1268_v13 = vpop.permute.xlu0 %1267 }
 0x248   :  { %v1568_v38 = vadd.f32 %v2567_v27, %v1514_v10  ;;  %v1570_v26 = vadd.f32 %v2572_v31, %v1516_v8  ;;  %v1445_v41 = vrot.slane %v1364_v57, 1  ;;  %v1304_v15 = vsel %vm1287_vm2, %v1266_v30, %v1268_v13  ;;  %v1270_v40 = vpop.permute.xlu1 %1269 }
 0x249   :  { %v1569_v61 = vadd.f32 %v2570_v12, %v1515_v3  ;;  %v1365_v7 = vmax.f32 %v2485_v53, %v1304_v15  ;;  %v1305_v48 = vsel %vm1287_vm2, %v1268_v13, %v1270_v40  ;;  %v1367_v17 = vmax.f32 %v2481_v50, %v1270_v40 }
 0x24a   :  { %1744 = vst [vmem:[%s2783_s3 + $0x68] sm:$0x7f] %v1568_v38  ;;  %v1446_v32 = vsel %vm1408_vm3, %v1437_v2, %v1445_v41  ;;  %v1366_v18 = vmax.f32 %v2479_v49, %v1305_v48  ;;  %1746 = vst.msk [vmem:[%s2783_s3 + $0x78] sm:$0x7f] %vm1594_vm4, %v1570_v26 }
 0x24b   :  { %1745 = vst [vmem:[%s2783_s3 + $0x70] sm:$0x7f] %v1569_v61  ;;  %v1517_v53 = vmax.f32 %v1360_v37, %v1446_v32  ;;  %v1447_v20 = vrot.slane %v1365_v7, 1  ;;  %v1451_v50 = vrot.slane %v1367_v17, 1  ;;  %v1272_v22 = vpop.permute.xlu0 %1271 }
 0x24c   :  { %v1449_v21 = vrot.slane %v1366_v18, 1  ;;  %v1274_v39 = vpop.permute.xlu1 %1273 }
 0x24d   :  { %v1571_v23 = vadd.f32 %v2561_v52, %v1517_v53  ;;  %v1448_v16 = vsel %vm1408_vm3, %v1439_v45, %v1447_v20  ;;  %v1452_v49 = vsel %vm1408_vm3, %v1443_v44, %v1451_v50  ;;  %v1306_v34 = vsel %vm1287_vm2, %v1272_v22, %v1274_v39 }
 0x24e   :  { %v1518_v24 = vmax.f32 %v1361_v46, %v1448_v16  ;;  %v1450_v14 = vsel %vm1408_vm3, %v1441_v1, %v1449_v21  ;;  %v1520_v62 = vmax.f32 %v1363_v25, %v1452_v49  ;;  %v1368_v28 = vmax.f32 %v2489_v54, %v1306_v34 }
 0x24f   :  { %1747 = vst [vmem:[%s2783_s3 + $0x80] sm:$0xff] %v1571_v23  ;;  %v1519_v37 = vmax.f32 %v1362_v0, %v1450_v14  ;;  %v1276_v36 = vpop.permute.xlu0 %1275 }
 0x250   :  { %v1572_v2 = vadd.f32 %v2567_v27, %v1518_v24  ;;  %v1574_v58 = vadd.f32 %v2572_v31, %v1520_v62  ;;  %v1453_v11 = vrot.slane %v1368_v28, 1  ;;  %v1307_v19 = vsel %vm1287_vm2, %v1274_v39, %v1276_v36  ;;  %v1278_v42 = vpop.permute.xlu1 %1277 }
 0x251   :  { %v1573_v46 = vadd.f32 %v2570_v12, %v1519_v37  ;;  %v1369_v25 = vmax.f32 %v2497_v59, %v1307_v19  ;;  %v1308_v54 = vsel %vm1287_vm2, %v1276_v36, %v1278_v42  ;;  %v1371_v51 = vmax.f32 %v2493_v56, %v1278_v42 }
 0x252   :  { %1748 = vst [vmem:[%s2783_s3 + $0x88] sm:$0xff] %v1572_v2  ;;  %1750 = vst.msk [vmem:[%s2783_s3 + $0x98] sm:$0xff] %vm1287_vm2, %v1574_v58  ;;  %v1454_v0 = vsel %vm1408_vm3, %v1445_v41, %v1453_v11  ;;  %v1370_v47 = vmax.f32 %v2491_v55, %v1308_v54 }
 0x253   :  { %1749 = vst [vmem:[%s2783_s3 + $0x90] sm:$0xff] %v1573_v46  ;;  %v1521_v59 = vmax.f32 %v1364_v57, %v1454_v0  ;;  %v1455_v45 = vrot.slane %v1369_v25, 1  ;;  %v1459_v56 = vrot.slane %v1371_v51, 1  ;;  %v1280_v44 = vpop.permute.xlu0 %1279 }
 0x254   :  { %v1457_v35 = vrot.slane %v1370_v47, 1  ;;  %v1282_v1 = vpop.permute.xlu1 %1281 }
 0x255   :  { %v1575_v30 = vadd.f32 %v2561_v52, %v1521_v59  ;;  %v1456_v33 = vsel %vm1408_vm3, %v1447_v20, %v1455_v45  ;;  %v1460_v4 = vsel %vm1408_vm3, %v1451_v50, %v1459_v56  ;;  %v1309_v29 = vsel %vm1287_vm2, %v1280_v44, %v1282_v1 }
 0x256   :  { %v1522_v9 = vmax.f32 %v1365_v7, %v1456_v33  ;;  %v1458_v55 = vsel %vm1408_vm3, %v1449_v21, %v1457_v35  ;;  %v1524_v10 = vmax.f32 %v1367_v17, %v1460_v4  ;;  %v1372_v43 = vmax.f32 %v2501_v60, %v1309_v29 }
 0x257   :  { %1751 = vst [vmem:[%s2783_s3 + $0xa0] sm:$0x7f] %v1575_v30  ;;  %v1523_v8 = vmax.f32 %v1366_v18, %v1458_v55  ;;  %v1284_v57 = vpop.permute.xlu0 %1283 }
 0x258   :  { %v1576_v3 = vadd.f32 %v2567_v27, %v1522_v9  ;;  %v1578_v13 = vadd.f32 %v2572_v31, %v1524_v10  ;;  %v1461_v38 = vrot.slane %v1372_v43, 1  ;;  %v1310_v26 = vsel %vm1287_vm2, %v1282_v1, %v1284_v57  ;;  %v1286_v41 = vpop.permute.xlu1 %1285 }
 0x259   :  { %v1577_v15 = vadd.f32 %v2570_v12, %v1523_v8  ;;  %v1373_v40 = vmax.f32 %v2509_v6, %v1310_v26  ;;  %v1311_v60 = vsel %vm1287_vm2, %v1284_v57, %v1286_v41  ;;  %v1375_v61 = vmax.f32 %v2505_v5, %v1286_v41 }
 0x25a   :  { %1752 = vst [vmem:[%s2783_s3 + $0xa8] sm:$0x7f] %v1576_v3  ;;  %v1462_v7 = vsel %vm1408_vm3, %v1453_v11, %v1461_v38  ;;  %v1529_v48 = vmax.f32 %v1372_v43, %v1461_v38  ;;  %1754 = vst.msk [vmem:[%s2783_s3 + $0xb8] sm:$0x7f] %vm1594_vm4, %v1578_v13  ;;  %v1374_v17 = vmax.f32 %v2503_v63, %v1311_v60 }
 0x25b   :  { %1753 = vst [vmem:[%s2783_s3 + $0xb0] sm:$0x7f] %v1577_v15  ;;  %v1525_v6 = vmax.f32 %v1368_v28, %v1462_v7  ;;  %v1463_v5 = vrot.slane %v1373_v40, 1  ;;  %v1467_v32 = vrot.slane %v1375_v61, 1 }
 0x25c   :  { %v1583_v18 = vadd.f32 %v2561_v52, %v1529_v48  ;;  %v1465_v53 = vrot.slane %v1374_v17, 1 }
 0x25d   :  { %v1579_v20 = vadd.f32 %v2561_v52, %v1525_v6  ;;  %v1464_v50 = vsel %vm1408_vm3, %v1455_v45, %v1463_v5  ;;  %v1530_v22 = vmax.f32 %v1373_v40, %v1463_v5  ;;  %v1468_v21 = vsel %vm1408_vm3, %v1459_v56, %v1467_v32 }
 0x25e   :  { %1759 = vst [vmem:[%s2783_s3 + $0xe0] sm:$0x7f] %v1583_v18  ;;  %v1526_v63 = vmax.f32 %v1369_v25, %v1464_v50  ;;  %v1466_v39 = vsel %vm1408_vm3, %v1457_v35, %v1465_v53  ;;  %v1528_v23 = vmax.f32 %v1371_v51, %v1468_v21  ;;  %v1531_v16 = vmax.f32 %v1374_v17, %v1465_v53 }
 0x25f   :  { %1755 = vst [vmem:[%s2783_s3 + $0xc0] sm:$0xff] %v1579_v20  ;;  %v1584_v52 = vadd.f32 %v2567_v27, %v1530_v22  ;;  %v1527_v49 = vmax.f32 %v1370_v47, %v1466_v39  ;;  %v1532_v34 = vmax.f32 %v1375_v61, %v1467_v32 }
 0x260   :  { %v1580_v24 = vadd.f32 %v2567_v27, %v1526_v63  ;;  %v1582_v14 = vadd.f32 %v2572_v31, %v1528_v23  ;;  %v1585_v62 = vadd.f32 %v2570_v12, %v1531_v16 }
 0x261   :  { %1760 = vst [vmem:[%s2783_s3 + $0xe8] sm:$0x7f] %v1584_v52  ;;  %v1581_v28 = vadd.f32 %v2570_v12, %v1527_v49  ;;  %v1586_v37 = vadd.f32 %v2572_v31, %v1532_v34 }
 0x262   :  { %1756 = vst [vmem:[%s2783_s3 + $0xc8] sm:$0xff] %v1580_v24  ;;  %1758 = vst.msk [vmem:[%s2783_s3 + $0xd8] sm:$0xff] %vm1287_vm2, %v1582_v14 }
 0x263   :  { %1761 = vst [vmem:[%s2783_s3 + $0xf0] sm:$0x7f] %v1585_v62  ;;  %1757 = vst [vmem:[%s2783_s3 + $0xd0] sm:$0xff] %v1581_v28 }
 0x264   :  { %1762 = vst.msk [vmem:[%s2783_s3 + $0xf8] sm:$0x7f] %vm1594_vm4, %v1586_v37 }

</bundles_post_ra>
